<compile_context>
chip_gen: v7x
topology: tpu7x:2x2x1
jax: 0.10.0
libtpu: 0.0.40
codegen_flags: <defaults>
</compile_context>

<pallas_src>
import jax
import jax.numpy as jnp
from jax import lax
from jax.experimental import pallas as pl
from jax.experimental.pallas import tpu as pltpu


# ----------------------------------------------------------------------------
# Fused kernel: [hoisted projections] -> [GRU recurrence] -> [batched fc2]
# ----------------------------------------------------------------------------
def drqn_kernel(
    x_ref,      # (S*B, OBS)  bf16, time-major flattened observations
    h0_ref,     # (B, H)      f32 initial hidden state
    w1_ref,     # (OBS, F)    bf16 body fc1 weight (transposed vs torch)
    b1_ref,     # (1, F)      f32
    wih_ref,    # (F, 3H)     bf16 GRU input weights packed [r|z|n]
    bih_ref,    # (1, 3H)     f32  GRU input bias   packed [r|z|n]
    whh_ref,    # (H, 3H)     bf16 GRU hidden weights packed [r|z|n]
    bhh_ref,    # (1, 3H)     f32  GRU hidden bias   packed [r|z|n]
    w2_ref,     # (H, A)      bf16 fc2 weight (transposed vs torch)
    b2_ref,     # (1, A)      f32
    q_ref,      # (S*B, A)    f32 output (time-major flattened)
    hlast_ref,  # (B, H)      f32 final hidden state
    hs_ref,     # VMEM (S*B, H) f32 scratch: all per-step hidden states
):
    B, H = hlast_ref.shape
    SB = q_ref.shape[0]
    S = SB // B

    # ---- Phase 1: hoisted, batched projections (one MXU pass each) ----------
    feats = jnp.maximum(
        jnp.dot(x_ref[...], w1_ref[...], preferred_element_type=jnp.float32)
        + b1_ref[...],
        0.0,
    )  # (S*B, F) f32
    gx = (
        jnp.dot(feats.astype(jnp.bfloat16), wih_ref[...],
                preferred_element_type=jnp.float32)
        + bih_ref[...]
    )  # (S*B, 3H) f32 — precomputed input-gate activations for every timestep

    whh = whh_ref[...]   # (H, 3H) bf16, loaded once
    bhh = bhh_ref[...]   # (1, 3H) f32

    # ---- Phase 2: sequential GRU recurrence (only h @ W_hh is in the loop) --
    # Static full unroll: S is small, indices are Python ints -> zero-cost slices.
    h = h0_ref[...]      # (B, H) f32
    for t in range(S):
        gx_t = gx[t * B:(t + 1) * B, :]                              # (B, 3H)
        gh = (
            jnp.dot(h.astype(jnp.bfloat16), whh,
                    preferred_element_type=jnp.float32)
            + bhh
        )                                                            # (B, 3H)
        r = jax.nn.sigmoid(gx_t[:, :H] + gh[:, :H])
        z = jax.nn.sigmoid(gx_t[:, H:2 * H] + gh[:, H:2 * H])
        n = jnp.tanh(gx_t[:, 2 * H:] + r * gh[:, 2 * H:])
        h = (1.0 - z) * n + z * h
        hs_ref[t * B:(t + 1) * B, :] = h                             # static store
    hlast_ref[...] = h

    # ---- Phase 3: fc2 over all timesteps at once (single MXU pass) ----------
    q_ref[...] = (
        jnp.dot(hs_ref[...].astype(jnp.bfloat16), w2_ref[...],
                preferred_element_type=jnp.float32)
        + b2_ref[...]
    )


# ----------------------------------------------------------------------------
# Wrapper (batch_first in / batch_first out, like the torch module)
# ----------------------------------------------------------------------------
def drqn_forward(x_bsd, params, hx=None):
    """x_bsd: (B, S, OBS) float32. Returns (q: (B, S, A), hidden: (1, B, H))."""
    B, S, OBS = x_bsd.shape
    H = params["w_hh"].shape[0]
    A = params["w2"].shape[1]

    if hx is None:
        h0 = jnp.zeros((B, H), jnp.float32)          # init_hidden
    else:
        h0 = hx.reshape(B, H).astype(jnp.float32)

    # Time-major flatten so each recurrence step reads a contiguous (B, .) block.
    x_flat = (
        jnp.transpose(x_bsd, (1, 0, 2)).reshape(S * B, OBS).astype(jnp.bfloat16)
    )

    bf16 = lambda a: a.astype(jnp.bfloat16)
    f32 = lambda a: a.astype(jnp.float32)

    # Single invocation (no grid): the whole problem (weights + x + q + scratch)
    # is tens of KB, far under VMEM on v5e/v6e/v7x, so all refs live fully in VMEM.
    q_flat, h_last = pl.pallas_call(
        drqn_kernel,
        out_shape=(
            jax.ShapeDtypeStruct((S * B, A), jnp.float32),
            jax.ShapeDtypeStruct((B, H), jnp.float32),
        ),
        scratch_shapes=[pltpu.VMEM((S * B, H), jnp.float32)],
    )(
        x_flat, h0,
        bf16(params["w1"]), f32(params["b1"]),
        bf16(params["w_ih"]), f32(params["b_ih"]),
        bf16(params["w_hh"]), f32(params["b_hh"]),
        bf16(params["w2"]), f32(params["b2"]),
    )

    q = q_flat.reshape(S, B, A).transpose(1, 0, 2)   # back to batch_first
    return q, h_last[None]                           # hidden: (1, B, H)


# ----------------------------------------------------------------------------
# Pure-JAX reference (true module semantics; matmul_dtype simulates MXU casts)
# ----------------------------------------------------------------------------
def drqn_reference(x_bsd, params, hx=None, matmul_dtype=jnp.float32):
    B, S, OBS = x_bsd.shape
    H = params["w_hh"].shape[0]
    h0 = (jnp.zeros((B, H), jnp.float32) if hx is None
          else hx.reshape(B, H).astype(jnp.float32))

    def mm(a, w):
        return jnp.dot(a.astype(matmul_dtype), w.astype(matmul_dtype),
                       preferred_element_type=jnp.float32)

    feats = jax.nn.relu(mm(x_bsd.reshape(B * S, OBS), params["w1"]) + params["b1"])
    gx_all = mm(feats, params["w_ih"]) + params["b_ih"]            # (B*S, 3H)
    gx_all = gx_all.reshape(B, S, -1).swapaxes(0, 1)               # (S, B, 3H)

    def step(h, gx_t):
        gh = mm(h, params["w_hh"]) + params["b_hh"]
        r = jax.nn.sigmoid(gx_t[:, :H] + gh[:, :H])
        z = jax.nn.sigmoid(gx_t[:, H:2 * H] + gh[:, H:2 * H])
        n = jnp.tanh(gx_t[:, 2 * H:] + r * gh[:, 2 * H:])
        h_new = (1.0 - z) * n + z * h
        return h_new, h_new

    h_last, hs = lax.scan(step, h0, gx_all)                        # hs: (S, B, H)
    q = mm(hs.reshape(S * B, H), params["w2"]) + params["b2"]      # (S*B, A)
    q = q.reshape(S, B, -1).swapaxes(0, 1)                         # (B, S, A)
    return q, h_last[None]


# ----------------------------------------------------------------------------
# Deterministic parameter init (shapes per DRQN.__init__, scaled down)
# ----------------------------------------------------------------------------
def make_params(key, obs, feat, hidden, actions):
    ks = jax.random.split(key, 8)
    s = 0.1
    return {
        "w1":   s * jax.random.normal(ks[0], (obs, feat), jnp.float32),
        "b1":   s * jax.random.normal(ks[1], (1, feat), jnp.float32),
        "w_ih": s * jax.random.normal(ks[2], (feat, 3 * hidden), jnp.float32),
        "b_ih": s * jax.random.normal(ks[3], (1, 3 * hidden), jnp.float32),
        "w_hh": s * jax.random.normal(ks[4], (hidden, 3 * hidden), jnp.float32),
        "b_hh": s * jax.random.normal(ks[5], (1, 3 * hidden), jnp.float32),
        "w2":   s * jax.random.normal(ks[6], (hidden, actions), jnp.float32),
        "b2":   s * jax.random.normal(ks[7], (1, actions), jnp.float32),
    }


if __name__ == "__main__":
    # Small shapes consistent with the module: obs_dim=16, feat=32, gru=32, A=4
    B, S, OBS, FEAT, HID, ACT = 2, 8, 16, 32, 32, 4

    key = jax.random.PRNGKey(0)
    params = make_params(jax.random.fold_in(key, 7), OBS, FEAT, HID, ACT)
    x = jax.random.normal(jax.random.fold_in(key, 1), (B, S, OBS), jnp.float32)

    q, hidden = drqn_forward(x, params)          # hx=None -> zero init_hidden
    q = jax.block_until_ready(q)
    hidden = jax.block_until_ready(hidden)

    assert q.shape == (B, S, ACT) and hidden.shape == (1, B, HID)

    # Structural check: reference with identical bf16 matmul inputs / f32 accum.
    q_s, h_s = drqn_reference(x, params, matmul_dtype=jnp.bfloat16)
    assert jnp.allclose(q, q_s, atol=1e-3, rtol=1e-3)
    assert jnp.allclose(hidden, h_s, atol=1e-3, rtol=1e-3)

    # Semantic check vs full-f32 module math (bf16 rounding tolerance).
    q_f, h_f = drqn_reference(x, params, matmul_dtype=jnp.float32)
    assert jnp.allclose(q, q_f, atol=5e-2, rtol=5e-2)
    assert jnp.allclose(hidden, h_f, atol=5e-2, rtol=5e-2)

    print("KERNEL_OK")
</pallas_src>

<mosaic_0001>
module attributes {stable_mosaic.version = 11 : i64} {
  func.func @drqn_kernel(%arg0: memref<16x16xbf16, #tpu.memory_space<vmem>>, %arg1: memref<2x32xf32, #tpu.memory_space<vmem>>, %arg2: memref<16x32xbf16, #tpu.memory_space<vmem>>, %arg3: memref<1x32xf32, #tpu.memory_space<vmem>>, %arg4: memref<32x96xbf16, #tpu.memory_space<vmem>>, %arg5: memref<1x96xf32, #tpu.memory_space<vmem>>, %arg6: memref<32x96xbf16, #tpu.memory_space<vmem>>, %arg7: memref<1x96xf32, #tpu.memory_space<vmem>>, %arg8: memref<32x4xbf16, #tpu.memory_space<vmem>>, %arg9: memref<1x4xf32, #tpu.memory_space<vmem>>, %arg10: memref<16x4xf32, #tpu.memory_space<vmem>>, %arg11: memref<2x32xf32, #tpu.memory_space<vmem>>, %arg12: memref<16x32xf32, #tpu.memory_space<vmem>>) attributes {dimension_semantics = [], scalar_prefetch = 0 : i64, scratch_operands = 1 : i64, tpu.core_type = #tpu.core_type<tc>} {
    %c0 = arith.constant 0 : index
    %c0_0 = arith.constant 0 : index
    %0 = vector.load %arg0[%c0, %c0_0] : memref<16x16xbf16, #tpu.memory_space<vmem>>, vector<16x16xbf16>
    %c0_1 = arith.constant 0 : index
    %c0_2 = arith.constant 0 : index
    %1 = vector.load %arg2[%c0_1, %c0_2] : memref<16x32xbf16, #tpu.memory_space<vmem>>, vector<16x32xbf16>
    %cst = arith.constant dense<0.000000e+00> : vector<16x32xf32>
    %2 = tpu.matmul %0, %1, %cst {dimension_numbers = #tpu.dot_dimension_numbers<[1], [0], [0], [1], [0, 0, 1, 1], [], []>} : vector<16x16xbf16>, vector<16x32xbf16>, vector<16x32xf32> -> vector<16x32xf32>
    %c0_3 = arith.constant 0 : index
    %c0_4 = arith.constant 0 : index
    %3 = vector.load %arg3[%c0_3, %c0_4] : memref<1x32xf32, #tpu.memory_space<vmem>>, vector<1x32xf32>
    %4 = vector.broadcast %3 : vector<1x32xf32> to vector<16x32xf32>
    %5 = arith.addf %2, %4 : vector<16x32xf32>
    %cst_5 = arith.constant 0.000000e+00 : f32
    %6 = vector.broadcast %cst_5 : f32 to vector<16x32xf32>
    %7 = arith.maximumf %5, %6 : vector<16x32xf32>
    %8 = arith.truncf %7 : vector<16x32xf32> to vector<16x32xbf16>
    %c0_6 = arith.constant 0 : index
    %c0_7 = arith.constant 0 : index
    %9 = vector.load %arg4[%c0_6, %c0_7] : memref<32x96xbf16, #tpu.memory_space<vmem>>, vector<32x96xbf16>
    %cst_8 = arith.constant dense<0.000000e+00> : vector<16x96xf32>
    %10 = tpu.matmul %8, %9, %cst_8 {dimension_numbers = #tpu.dot_dimension_numbers<[1], [0], [0], [1], [0, 0, 1, 1], [], []>} : vector<16x32xbf16>, vector<32x96xbf16>, vector<16x96xf32> -> vector<16x96xf32>
    %c0_9 = arith.constant 0 : index
    %c0_10 = arith.constant 0 : index
    %11 = vector.load %arg5[%c0_9, %c0_10] : memref<1x96xf32, #tpu.memory_space<vmem>>, vector<1x96xf32>
    %12 = vector.broadcast %11 : vector<1x96xf32> to vector<16x96xf32>
    %13 = arith.addf %10, %12 : vector<16x96xf32>
    %c0_11 = arith.constant 0 : index
    %c0_12 = arith.constant 0 : index
    %14 = vector.load %arg6[%c0_11, %c0_12] : memref<32x96xbf16, #tpu.memory_space<vmem>>, vector<32x96xbf16>
    %c0_13 = arith.constant 0 : index
    %c0_14 = arith.constant 0 : index
    %15 = vector.load %arg7[%c0_13, %c0_14] : memref<1x96xf32, #tpu.memory_space<vmem>>, vector<1x96xf32>
    %c0_15 = arith.constant 0 : index
    %c0_16 = arith.constant 0 : index
    %16 = vector.load %arg1[%c0_15, %c0_16] : memref<2x32xf32, #tpu.memory_space<vmem>>, vector<2x32xf32>
    %17 = vector.extract_strided_slice %13 {offsets = [0, 0], sizes = [2, 96], strides = [1, 1]} : vector<16x96xf32> to vector<2x96xf32>
    %18 = arith.truncf %16 : vector<2x32xf32> to vector<2x32xbf16>
    %cst_17 = arith.constant dense<0.000000e+00> : vector<2x96xf32>
    %19 = tpu.matmul %18, %14, %cst_17 {dimension_numbers = #tpu.dot_dimension_numbers<[1], [0], [0], [1], [0, 0, 1, 1], [], []>} : vector<2x32xbf16>, vector<32x96xbf16>, vector<2x96xf32> -> vector<2x96xf32>
    %20 = vector.broadcast %15 : vector<1x96xf32> to vector<2x96xf32>
    %21 = arith.addf %19, %20 : vector<2x96xf32>
    %22 = vector.extract_strided_slice %17 {offsets = [0, 0], sizes = [2, 32], strides = [1, 1]} : vector<2x96xf32> to vector<2x32xf32>
    %23 = vector.extract_strided_slice %21 {offsets = [0, 0], sizes = [2, 32], strides = [1, 1]} : vector<2x96xf32> to vector<2x32xf32>
    %24 = arith.addf %22, %23 : vector<2x32xf32>
    %25 = arith.negf %24 : vector<2x32xf32>
    %26 = math.exp %25 : vector<2x32xf32>
    %cst_18 = arith.constant 1.000000e+00 : f32
    %27 = vector.broadcast %cst_18 : f32 to vector<2x32xf32>
    %28 = arith.addf %27, %26 : vector<2x32xf32>
    %29 = arith.divf %27, %28 : vector<2x32xf32>
    %30 = vector.extract_strided_slice %17 {offsets = [0, 32], sizes = [2, 32], strides = [1, 1]} : vector<2x96xf32> to vector<2x32xf32>
    %31 = vector.extract_strided_slice %21 {offsets = [0, 32], sizes = [2, 32], strides = [1, 1]} : vector<2x96xf32> to vector<2x32xf32>
    %32 = arith.addf %30, %31 : vector<2x32xf32>
    %33 = arith.negf %32 : vector<2x32xf32>
    %34 = math.exp %33 : vector<2x32xf32>
    %cst_19 = arith.constant 1.000000e+00 : f32
    %35 = vector.broadcast %cst_19 : f32 to vector<2x32xf32>
    %36 = arith.addf %35, %34 : vector<2x32xf32>
    %37 = arith.divf %35, %36 : vector<2x32xf32>
    %38 = vector.extract_strided_slice %17 {offsets = [0, 64], sizes = [2, 32], strides = [1, 1]} : vector<2x96xf32> to vector<2x32xf32>
    %39 = vector.extract_strided_slice %21 {offsets = [0, 64], sizes = [2, 32], strides = [1, 1]} : vector<2x96xf32> to vector<2x32xf32>
    %40 = arith.mulf %29, %39 : vector<2x32xf32>
    %41 = arith.addf %38, %40 : vector<2x32xf32>
    %42 = math.tanh %41 : vector<2x32xf32>
    %cst_20 = arith.constant 1.000000e+00 : f32
    %43 = vector.broadcast %cst_20 : f32 to vector<2x32xf32>
    %44 = arith.subf %43, %37 : vector<2x32xf32>
    %45 = arith.mulf %44, %42 : vector<2x32xf32>
    %46 = arith.mulf %37, %16 : vector<2x32xf32>
    %47 = arith.addf %45, %46 : vector<2x32xf32>
    %c0_21 = arith.constant 0 : index
    %c0_22 = arith.constant 0 : index
    %48 = vector.load %arg12[%c0_21, %c0_22] : memref<16x32xf32, #tpu.memory_space<vmem>>, vector<2x32xf32>
    tpu.vector_store %arg12[%c0_21, %c0_22], %47 {strides = array<i32>} : memref<16x32xf32, #tpu.memory_space<vmem>>, vector<2x32xf32>,
    %49 = vector.extract_strided_slice %13 {offsets = [2, 0], sizes = [2, 96], strides = [1, 1]} : vector<16x96xf32> to vector<2x96xf32>
    %50 = arith.truncf %47 : vector<2x32xf32> to vector<2x32xbf16>
    %cst_23 = arith.constant dense<0.000000e+00> : vector<2x96xf32>
    %51 = tpu.matmul %50, %14, %cst_23 {dimension_numbers = #tpu.dot_dimension_numbers<[1], [0], [0], [1], [0, 0, 1, 1], [], []>} : vector<2x32xbf16>, vector<32x96xbf16>, vector<2x96xf32> -> vector<2x96xf32>
    %52 = vector.broadcast %15 : vector<1x96xf32> to vector<2x96xf32>
    %53 = arith.addf %51, %52 : vector<2x96xf32>
    %54 = vector.extract_strided_slice %49 {offsets = [0, 0], sizes = [2, 32], strides = [1, 1]} : vector<2x96xf32> to vector<2x32xf32>
    %55 = vector.extract_strided_slice %53 {offsets = [0, 0], sizes = [2, 32], strides = [1, 1]} : vector<2x96xf32> to vector<2x32xf32>
    %56 = arith.addf %54, %55 : vector<2x32xf32>
    %57 = arith.negf %56 : vector<2x32xf32>
    %58 = math.exp %57 : vector<2x32xf32>
    %cst_24 = arith.constant 1.000000e+00 : f32
    %59 = vector.broadcast %cst_24 : f32 to vector<2x32xf32>
    %60 = arith.addf %59, %58 : vector<2x32xf32>
    %61 = arith.divf %59, %60 : vector<2x32xf32>
    %62 = vector.extract_strided_slice %49 {offsets = [0, 32], sizes = [2, 32], strides = [1, 1]} : vector<2x96xf32> to vector<2x32xf32>
    %63 = vector.extract_strided_slice %53 {offsets = [0, 32], sizes = [2, 32], strides = [1, 1]} : vector<2x96xf32> to vector<2x32xf32>
    %64 = arith.addf %62, %63 : vector<2x32xf32>
    %65 = arith.negf %64 : vector<2x32xf32>
    %66 = math.exp %65 : vector<2x32xf32>
    %cst_25 = arith.constant 1.000000e+00 : f32
    %67 = vector.broadcast %cst_25 : f32 to vector<2x32xf32>
    %68 = arith.addf %67, %66 : vector<2x32xf32>
    %69 = arith.divf %67, %68 : vector<2x32xf32>
    %70 = vector.extract_strided_slice %49 {offsets = [0, 64], sizes = [2, 32], strides = [1, 1]} : vector<2x96xf32> to vector<2x32xf32>
    %71 = vector.extract_strided_slice %53 {offsets = [0, 64], sizes = [2, 32], strides = [1, 1]} : vector<2x96xf32> to vector<2x32xf32>
    %72 = arith.mulf %61, %71 : vector<2x32xf32>
    %73 = arith.addf %70, %72 : vector<2x32xf32>
    %74 = math.tanh %73 : vector<2x32xf32>
    %cst_26 = arith.constant 1.000000e+00 : f32
    %75 = vector.broadcast %cst_26 : f32 to vector<2x32xf32>
    %76 = arith.subf %75, %69 : vector<2x32xf32>
    %77 = arith.mulf %76, %74 : vector<2x32xf32>
    %78 = arith.mulf %69, %47 : vector<2x32xf32>
    %79 = arith.addf %77, %78 : vector<2x32xf32>
    %c2 = arith.constant 2 : index
    %c0_27 = arith.constant 0 : index
    %80 = vector.load %arg12[%c2, %c0_27] : memref<16x32xf32, #tpu.memory_space<vmem>>, vector<2x32xf32>
    tpu.vector_store %arg12[%c2, %c0_27], %79 {strides = array<i32>} : memref<16x32xf32, #tpu.memory_space<vmem>>, vector<2x32xf32>,
    %81 = vector.extract_strided_slice %13 {offsets = [4, 0], sizes = [2, 96], strides = [1, 1]} : vector<16x96xf32> to vector<2x96xf32>
    %82 = arith.truncf %79 : vector<2x32xf32> to vector<2x32xbf16>
    %cst_28 = arith.constant dense<0.000000e+00> : vector<2x96xf32>
    %83 = tpu.matmul %82, %14, %cst_28 {dimension_numbers = #tpu.dot_dimension_numbers<[1], [0], [0], [1], [0, 0, 1, 1], [], []>} : vector<2x32xbf16>, vector<32x96xbf16>, vector<2x96xf32> -> vector<2x96xf32>
    %84 = vector.broadcast %15 : vector<1x96xf32> to vector<2x96xf32>
    %85 = arith.addf %83, %84 : vector<2x96xf32>
    %86 = vector.extract_strided_slice %81 {offsets = [0, 0], sizes = [2, 32], strides = [1, 1]} : vector<2x96xf32> to vector<2x32xf32>
    %87 = vector.extract_strided_slice %85 {offsets = [0, 0], sizes = [2, 32], strides = [1, 1]} : vector<2x96xf32> to vector<2x32xf32>
    %88 = arith.addf %86, %87 : vector<2x32xf32>
    %89 = arith.negf %88 : vector<2x32xf32>
    %90 = math.exp %89 : vector<2x32xf32>
    %cst_29 = arith.constant 1.000000e+00 : f32
    %91 = vector.broadcast %cst_29 : f32 to vector<2x32xf32>
    %92 = arith.addf %91, %90 : vector<2x32xf32>
    %93 = arith.divf %91, %92 : vector<2x32xf32>
    %94 = vector.extract_strided_slice %81 {offsets = [0, 32], sizes = [2, 32], strides = [1, 1]} : vector<2x96xf32> to vector<2x32xf32>
    %95 = vector.extract_strided_slice %85 {offsets = [0, 32], sizes = [2, 32], strides = [1, 1]} : vector<2x96xf32> to vector<2x32xf32>
    %96 = arith.addf %94, %95 : vector<2x32xf32>
    %97 = arith.negf %96 : vector<2x32xf32>
    %98 = math.exp %97 : vector<2x32xf32>
    %cst_30 = arith.constant 1.000000e+00 : f32
    %99 = vector.broadcast %cst_30 : f32 to vector<2x32xf32>
    %100 = arith.addf %99, %98 : vector<2x32xf32>
    %101 = arith.divf %99, %100 : vector<2x32xf32>
    %102 = vector.extract_strided_slice %81 {offsets = [0, 64], sizes = [2, 32], strides = [1, 1]} : vector<2x96xf32> to vector<2x32xf32>
    %103 = vector.extract_strided_slice %85 {offsets = [0, 64], sizes = [2, 32], strides = [1, 1]} : vector<2x96xf32> to vector<2x32xf32>
    %104 = arith.mulf %93, %103 : vector<2x32xf32>
    %105 = arith.addf %102, %104 : vector<2x32xf32>
    %106 = math.tanh %105 : vector<2x32xf32>
    %cst_31 = arith.constant 1.000000e+00 : f32
    %107 = vector.broadcast %cst_31 : f32 to vector<2x32xf32>
    %108 = arith.subf %107, %101 : vector<2x32xf32>
    %109 = arith.mulf %108, %106 : vector<2x32xf32>
    %110 = arith.mulf %101, %79 : vector<2x32xf32>
    %111 = arith.addf %109, %110 : vector<2x32xf32>
    %c4 = arith.constant 4 : index
    %c0_32 = arith.constant 0 : index
    %112 = vector.load %arg12[%c4, %c0_32] : memref<16x32xf32, #tpu.memory_space<vmem>>, vector<2x32xf32>
    tpu.vector_store %arg12[%c4, %c0_32], %111 {strides = array<i32>} : memref<16x32xf32, #tpu.memory_space<vmem>>, vector<2x32xf32>,
    %113 = vector.extract_strided_slice %13 {offsets = [6, 0], sizes = [2, 96], strides = [1, 1]} : vector<16x96xf32> to vector<2x96xf32>
    %114 = arith.truncf %111 : vector<2x32xf32> to vector<2x32xbf16>
    %cst_33 = arith.constant dense<0.000000e+00> : vector<2x96xf32>
    %115 = tpu.matmul %114, %14, %cst_33 {dimension_numbers = #tpu.dot_dimension_numbers<[1], [0], [0], [1], [0, 0, 1, 1], [], []>} : vector<2x32xbf16>, vector<32x96xbf16>, vector<2x96xf32> -> vector<2x96xf32>
    %116 = vector.broadcast %15 : vector<1x96xf32> to vector<2x96xf32>
    %117 = arith.addf %115, %116 : vector<2x96xf32>
    %118 = vector.extract_strided_slice %113 {offsets = [0, 0], sizes = [2, 32], strides = [1, 1]} : vector<2x96xf32> to vector<2x32xf32>
    %119 = vector.extract_strided_slice %117 {offsets = [0, 0], sizes = [2, 32], strides = [1, 1]} : vector<2x96xf32> to vector<2x32xf32>
    %120 = arith.addf %118, %119 : vector<2x32xf32>
    %121 = arith.negf %120 : vector<2x32xf32>
    %122 = math.exp %121 : vector<2x32xf32>
    %cst_34 = arith.constant 1.000000e+00 : f32
    %123 = vector.broadcast %cst_34 : f32 to vector<2x32xf32>
    %124 = arith.addf %123, %122 : vector<2x32xf32>
    %125 = arith.divf %123, %124 : vector<2x32xf32>
    %126 = vector.extract_strided_slice %113 {offsets = [0, 32], sizes = [2, 32], strides = [1, 1]} : vector<2x96xf32> to vector<2x32xf32>
    %127 = vector.extract_strided_slice %117 {offsets = [0, 32], sizes = [2, 32], strides = [1, 1]} : vector<2x96xf32> to vector<2x32xf32>
    %128 = arith.addf %126, %127 : vector<2x32xf32>
    %129 = arith.negf %128 : vector<2x32xf32>
    %130 = math.exp %129 : vector<2x32xf32>
    %cst_35 = arith.constant 1.000000e+00 : f32
    %131 = vector.broadcast %cst_35 : f32 to vector<2x32xf32>
    %132 = arith.addf %131, %130 : vector<2x32xf32>
    %133 = arith.divf %131, %132 : vector<2x32xf32>
    %134 = vector.extract_strided_slice %113 {offsets = [0, 64], sizes = [2, 32], strides = [1, 1]} : vector<2x96xf32> to vector<2x32xf32>
    %135 = vector.extract_strided_slice %117 {offsets = [0, 64], sizes = [2, 32], strides = [1, 1]} : vector<2x96xf32> to vector<2x32xf32>
    %136 = arith.mulf %125, %135 : vector<2x32xf32>
    %137 = arith.addf %134, %136 : vector<2x32xf32>
    %138 = math.tanh %137 : vector<2x32xf32>
    %cst_36 = arith.constant 1.000000e+00 : f32
    %139 = vector.broadcast %cst_36 : f32 to vector<2x32xf32>
    %140 = arith.subf %139, %133 : vector<2x32xf32>
    %141 = arith.mulf %140, %138 : vector<2x32xf32>
    %142 = arith.mulf %133, %111 : vector<2x32xf32>
    %143 = arith.addf %141, %142 : vector<2x32xf32>
    %c6 = arith.constant 6 : index
    %c0_37 = arith.constant 0 : index
    %144 = vector.load %arg12[%c6, %c0_37] : memref<16x32xf32, #tpu.memory_space<vmem>>, vector<2x32xf32>
    tpu.vector_store %arg12[%c6, %c0_37], %143 {strides = array<i32>} : memref<16x32xf32, #tpu.memory_space<vmem>>, vector<2x32xf32>,
    %145 = vector.extract_strided_slice %13 {offsets = [8, 0], sizes = [2, 96], strides = [1, 1]} : vector<16x96xf32> to vector<2x96xf32>
    %146 = arith.truncf %143 : vector<2x32xf32> to vector<2x32xbf16>
    %cst_38 = arith.constant dense<0.000000e+00> : vector<2x96xf32>
    %147 = tpu.matmul %146, %14, %cst_38 {dimension_numbers = #tpu.dot_dimension_numbers<[1], [0], [0], [1], [0, 0, 1, 1], [], []>} : vector<2x32xbf16>, vector<32x96xbf16>, vector<2x96xf32> -> vector<2x96xf32>
    %148 = vector.broadcast %15 : vector<1x96xf32> to vector<2x96xf32>
    %149 = arith.addf %147, %148 : vector<2x96xf32>
    %150 = vector.extract_strided_slice %145 {offsets = [0, 0], sizes = [2, 32], strides = [1, 1]} : vector<2x96xf32> to vector<2x32xf32>
    %151 = vector.extract_strided_slice %149 {offsets = [0, 0], sizes = [2, 32], strides = [1, 1]} : vector<2x96xf32> to vector<2x32xf32>
    %152 = arith.addf %150, %151 : vector<2x32xf32>
    %153 = arith.negf %152 : vector<2x32xf32>
    %154 = math.exp %153 : vector<2x32xf32>
    %cst_39 = arith.constant 1.000000e+00 : f32
    %155 = vector.broadcast %cst_39 : f32 to vector<2x32xf32>
    %156 = arith.addf %155, %154 : vector<2x32xf32>
    %157 = arith.divf %155, %156 : vector<2x32xf32>
    %158 = vector.extract_strided_slice %145 {offsets = [0, 32], sizes = [2, 32], strides = [1, 1]} : vector<2x96xf32> to vector<2x32xf32>
    %159 = vector.extract_strided_slice %149 {offsets = [0, 32], sizes = [2, 32], strides = [1, 1]} : vector<2x96xf32> to vector<2x32xf32>
    %160 = arith.addf %158, %159 : vector<2x32xf32>
    %161 = arith.negf %160 : vector<2x32xf32>
    %162 = math.exp %161 : vector<2x32xf32>
    %cst_40 = arith.constant 1.000000e+00 : f32
    %163 = vector.broadcast %cst_40 : f32 to vector<2x32xf32>
    %164 = arith.addf %163, %162 : vector<2x32xf32>
    %165 = arith.divf %163, %164 : vector<2x32xf32>
    %166 = vector.extract_strided_slice %145 {offsets = [0, 64], sizes = [2, 32], strides = [1, 1]} : vector<2x96xf32> to vector<2x32xf32>
    %167 = vector.extract_strided_slice %149 {offsets = [0, 64], sizes = [2, 32], strides = [1, 1]} : vector<2x96xf32> to vector<2x32xf32>
    %168 = arith.mulf %157, %167 : vector<2x32xf32>
    %169 = arith.addf %166, %168 : vector<2x32xf32>
    %170 = math.tanh %169 : vector<2x32xf32>
    %cst_41 = arith.constant 1.000000e+00 : f32
    %171 = vector.broadcast %cst_41 : f32 to vector<2x32xf32>
    %172 = arith.subf %171, %165 : vector<2x32xf32>
    %173 = arith.mulf %172, %170 : vector<2x32xf32>
    %174 = arith.mulf %165, %143 : vector<2x32xf32>
    %175 = arith.addf %173, %174 : vector<2x32xf32>
    %c8 = arith.constant 8 : index
    %c0_42 = arith.constant 0 : index
    %176 = vector.load %arg12[%c8, %c0_42] : memref<16x32xf32, #tpu.memory_space<vmem>>, vector<2x32xf32>
    tpu.vector_store %arg12[%c8, %c0_42], %175 {strides = array<i32>} : memref<16x32xf32, #tpu.memory_space<vmem>>, vector<2x32xf32>,
    %177 = vector.extract_strided_slice %13 {offsets = [10, 0], sizes = [2, 96], strides = [1, 1]} : vector<16x96xf32> to vector<2x96xf32>
    %178 = arith.truncf %175 : vector<2x32xf32> to vector<2x32xbf16>
    %cst_43 = arith.constant dense<0.000000e+00> : vector<2x96xf32>
    %179 = tpu.matmul %178, %14, %cst_43 {dimension_numbers = #tpu.dot_dimension_numbers<[1], [0], [0], [1], [0, 0, 1, 1], [], []>} : vector<2x32xbf16>, vector<32x96xbf16>, vector<2x96xf32> -> vector<2x96xf32>
    %180 = vector.broadcast %15 : vector<1x96xf32> to vector<2x96xf32>
    %181 = arith.addf %179, %180 : vector<2x96xf32>
    %182 = vector.extract_strided_slice %177 {offsets = [0, 0], sizes = [2, 32], strides = [1, 1]} : vector<2x96xf32> to vector<2x32xf32>
    %183 = vector.extract_strided_slice %181 {offsets = [0, 0], sizes = [2, 32], strides = [1, 1]} : vector<2x96xf32> to vector<2x32xf32>
    %184 = arith.addf %182, %183 : vector<2x32xf32>
    %185 = arith.negf %184 : vector<2x32xf32>
    %186 = math.exp %185 : vector<2x32xf32>
    %cst_44 = arith.constant 1.000000e+00 : f32
    %187 = vector.broadcast %cst_44 : f32 to vector<2x32xf32>
    %188 = arith.addf %187, %186 : vector<2x32xf32>
    %189 = arith.divf %187, %188 : vector<2x32xf32>
    %190 = vector.extract_strided_slice %177 {offsets = [0, 32], sizes = [2, 32], strides = [1, 1]} : vector<2x96xf32> to vector<2x32xf32>
    %191 = vector.extract_strided_slice %181 {offsets = [0, 32], sizes = [2, 32], strides = [1, 1]} : vector<2x96xf32> to vector<2x32xf32>
    %192 = arith.addf %190, %191 : vector<2x32xf32>
    %193 = arith.negf %192 : vector<2x32xf32>
    %194 = math.exp %193 : vector<2x32xf32>
    %cst_45 = arith.constant 1.000000e+00 : f32
    %195 = vector.broadcast %cst_45 : f32 to vector<2x32xf32>
    %196 = arith.addf %195, %194 : vector<2x32xf32>
    %197 = arith.divf %195, %196 : vector<2x32xf32>
    %198 = vector.extract_strided_slice %177 {offsets = [0, 64], sizes = [2, 32], strides = [1, 1]} : vector<2x96xf32> to vector<2x32xf32>
    %199 = vector.extract_strided_slice %181 {offsets = [0, 64], sizes = [2, 32], strides = [1, 1]} : vector<2x96xf32> to vector<2x32xf32>
    %200 = arith.mulf %189, %199 : vector<2x32xf32>
    %201 = arith.addf %198, %200 : vector<2x32xf32>
    %202 = math.tanh %201 : vector<2x32xf32>
    %cst_46 = arith.constant 1.000000e+00 : f32
    %203 = vector.broadcast %cst_46 : f32 to vector<2x32xf32>
    %204 = arith.subf %203, %197 : vector<2x32xf32>
    %205 = arith.mulf %204, %202 : vector<2x32xf32>
    %206 = arith.mulf %197, %175 : vector<2x32xf32>
    %207 = arith.addf %205, %206 : vector<2x32xf32>
    %c10 = arith.constant 10 : index
    %c0_47 = arith.constant 0 : index
    %208 = vector.load %arg12[%c10, %c0_47] : memref<16x32xf32, #tpu.memory_space<vmem>>, vector<2x32xf32>
    tpu.vector_store %arg12[%c10, %c0_47], %207 {strides = array<i32>} : memref<16x32xf32, #tpu.memory_space<vmem>>, vector<2x32xf32>,
    %209 = vector.extract_strided_slice %13 {offsets = [12, 0], sizes = [2, 96], strides = [1, 1]} : vector<16x96xf32> to vector<2x96xf32>
    %210 = arith.truncf %207 : vector<2x32xf32> to vector<2x32xbf16>
    %cst_48 = arith.constant dense<0.000000e+00> : vector<2x96xf32>
    %211 = tpu.matmul %210, %14, %cst_48 {dimension_numbers = #tpu.dot_dimension_numbers<[1], [0], [0], [1], [0, 0, 1, 1], [], []>} : vector<2x32xbf16>, vector<32x96xbf16>, vector<2x96xf32> -> vector<2x96xf32>
    %212 = vector.broadcast %15 : vector<1x96xf32> to vector<2x96xf32>
    %213 = arith.addf %211, %212 : vector<2x96xf32>
    %214 = vector.extract_strided_slice %209 {offsets = [0, 0], sizes = [2, 32], strides = [1, 1]} : vector<2x96xf32> to vector<2x32xf32>
    %215 = vector.extract_strided_slice %213 {offsets = [0, 0], sizes = [2, 32], strides = [1, 1]} : vector<2x96xf32> to vector<2x32xf32>
    %216 = arith.addf %214, %215 : vector<2x32xf32>
    %217 = arith.negf %216 : vector<2x32xf32>
    %218 = math.exp %217 : vector<2x32xf32>
    %cst_49 = arith.constant 1.000000e+00 : f32
    %219 = vector.broadcast %cst_49 : f32 to vector<2x32xf32>
    %220 = arith.addf %219, %218 : vector<2x32xf32>
    %221 = arith.divf %219, %220 : vector<2x32xf32>
    %222 = vector.extract_strided_slice %209 {offsets = [0, 32], sizes = [2, 32], strides = [1, 1]} : vector<2x96xf32> to vector<2x32xf32>
    %223 = vector.extract_strided_slice %213 {offsets = [0, 32], sizes = [2, 32], strides = [1, 1]} : vector<2x96xf32> to vector<2x32xf32>
    %224 = arith.addf %222, %223 : vector<2x32xf32>
    %225 = arith.negf %224 : vector<2x32xf32>
    %226 = math.exp %225 : vector<2x32xf32>
    %cst_50 = arith.constant 1.000000e+00 : f32
    %227 = vector.broadcast %cst_50 : f32 to vector<2x32xf32>
    %228 = arith.addf %227, %226 : vector<2x32xf32>
    %229 = arith.divf %227, %228 : vector<2x32xf32>
    %230 = vector.extract_strided_slice %209 {offsets = [0, 64], sizes = [2, 32], strides = [1, 1]} : vector<2x96xf32> to vector<2x32xf32>
    %231 = vector.extract_strided_slice %213 {offsets = [0, 64], sizes = [2, 32], strides = [1, 1]} : vector<2x96xf32> to vector<2x32xf32>
    %232 = arith.mulf %221, %231 : vector<2x32xf32>
    %233 = arith.addf %230, %232 : vector<2x32xf32>
    %234 = math.tanh %233 : vector<2x32xf32>
    %cst_51 = arith.constant 1.000000e+00 : f32
    %235 = vector.broadcast %cst_51 : f32 to vector<2x32xf32>
    %236 = arith.subf %235, %229 : vector<2x32xf32>
    %237 = arith.mulf %236, %234 : vector<2x32xf32>
    %238 = arith.mulf %229, %207 : vector<2x32xf32>
    %239 = arith.addf %237, %238 : vector<2x32xf32>
    %c12 = arith.constant 12 : index
    %c0_52 = arith.constant 0 : index
    %240 = vector.load %arg12[%c12, %c0_52] : memref<16x32xf32, #tpu.memory_space<vmem>>, vector<2x32xf32>
    tpu.vector_store %arg12[%c12, %c0_52], %239 {strides = array<i32>} : memref<16x32xf32, #tpu.memory_space<vmem>>, vector<2x32xf32>,
    %241 = vector.extract_strided_slice %13 {offsets = [14, 0], sizes = [2, 96], strides = [1, 1]} : vector<16x96xf32> to vector<2x96xf32>
    %242 = arith.truncf %239 : vector<2x32xf32> to vector<2x32xbf16>
    %cst_53 = arith.constant dense<0.000000e+00> : vector<2x96xf32>
    %243 = tpu.matmul %242, %14, %cst_53 {dimension_numbers = #tpu.dot_dimension_numbers<[1], [0], [0], [1], [0, 0, 1, 1], [], []>} : vector<2x32xbf16>, vector<32x96xbf16>, vector<2x96xf32> -> vector<2x96xf32>
    %244 = vector.broadcast %15 : vector<1x96xf32> to vector<2x96xf32>
    %245 = arith.addf %243, %244 : vector<2x96xf32>
    %246 = vector.extract_strided_slice %241 {offsets = [0, 0], sizes = [2, 32], strides = [1, 1]} : vector<2x96xf32> to vector<2x32xf32>
    %247 = vector.extract_strided_slice %245 {offsets = [0, 0], sizes = [2, 32], strides = [1, 1]} : vector<2x96xf32> to vector<2x32xf32>
    %248 = arith.addf %246, %247 : vector<2x32xf32>
    %249 = arith.negf %248 : vector<2x32xf32>
    %250 = math.exp %249 : vector<2x32xf32>
    %cst_54 = arith.constant 1.000000e+00 : f32
    %251 = vector.broadcast %cst_54 : f32 to vector<2x32xf32>
    %252 = arith.addf %251, %250 : vector<2x32xf32>
    %253 = arith.divf %251, %252 : vector<2x32xf32>
    %254 = vector.extract_strided_slice %241 {offsets = [0, 32], sizes = [2, 32], strides = [1, 1]} : vector<2x96xf32> to vector<2x32xf32>
    %255 = vector.extract_strided_slice %245 {offsets = [0, 32], sizes = [2, 32], strides = [1, 1]} : vector<2x96xf32> to vector<2x32xf32>
    %256 = arith.addf %254, %255 : vector<2x32xf32>
    %257 = arith.negf %256 : vector<2x32xf32>
    %258 = math.exp %257 : vector<2x32xf32>
    %cst_55 = arith.constant 1.000000e+00 : f32
    %259 = vector.broadcast %cst_55 : f32 to vector<2x32xf32>
    %260 = arith.addf %259, %258 : vector<2x32xf32>
    %261 = arith.divf %259, %260 : vector<2x32xf32>
    %262 = vector.extract_strided_slice %241 {offsets = [0, 64], sizes = [2, 32], strides = [1, 1]} : vector<2x96xf32> to vector<2x32xf32>
    %263 = vector.extract_strided_slice %245 {offsets = [0, 64], sizes = [2, 32], strides = [1, 1]} : vector<2x96xf32> to vector<2x32xf32>
    %264 = arith.mulf %253, %263 : vector<2x32xf32>
    %265 = arith.addf %262, %264 : vector<2x32xf32>
    %266 = math.tanh %265 : vector<2x32xf32>
    %cst_56 = arith.constant 1.000000e+00 : f32
    %267 = vector.broadcast %cst_56 : f32 to vector<2x32xf32>
    %268 = arith.subf %267, %261 : vector<2x32xf32>
    %269 = arith.mulf %268, %266 : vector<2x32xf32>
    %270 = arith.mulf %261, %239 : vector<2x32xf32>
    %271 = arith.addf %269, %270 : vector<2x32xf32>
    %c14 = arith.constant 14 : index
    %c0_57 = arith.constant 0 : index
    %272 = vector.load %arg12[%c14, %c0_57] : memref<16x32xf32, #tpu.memory_space<vmem>>, vector<2x32xf32>
    tpu.vector_store %arg12[%c14, %c0_57], %271 {strides = array<i32>} : memref<16x32xf32, #tpu.memory_space<vmem>>, vector<2x32xf32>,
    %c0_58 = arith.constant 0 : index
    %c0_59 = arith.constant 0 : index
    %273 = vector.load %arg11[%c0_58, %c0_59] : memref<2x32xf32, #tpu.memory_space<vmem>>, vector<2x32xf32>
    tpu.vector_store %arg11[%c0_58, %c0_59], %271 {strides = array<i32>} : memref<2x32xf32, #tpu.memory_space<vmem>>, vector<2x32xf32>,
    %c0_60 = arith.constant 0 : index
    %c0_61 = arith.constant 0 : index
    %274 = vector.load %arg12[%c0_60, %c0_61] : memref<16x32xf32, #tpu.memory_space<vmem>>, vector<16x32xf32>
    %275 = arith.truncf %274 : vector<16x32xf32> to vector<16x32xbf16>
    %c0_62 = arith.constant 0 : index
    %c0_63 = arith.constant 0 : index
    %276 = vector.load %arg8[%c0_62, %c0_63] : memref<32x4xbf16, #tpu.memory_space<vmem>>, vector<32x4xbf16>
    %cst_64 = arith.constant dense<0.000000e+00> : vector<16x4xf32>
    %277 = tpu.matmul %275, %276, %cst_64 {dimension_numbers = #tpu.dot_dimension_numbers<[1], [0], [0], [1], [0, 0, 1, 1], [], []>} : vector<16x32xbf16>, vector<32x4xbf16>, vector<16x4xf32> -> vector<16x4xf32>
    %c0_65 = arith.constant 0 : index
    %c0_66 = arith.constant 0 : index
    %278 = vector.load %arg9[%c0_65, %c0_66] : memref<1x4xf32, #tpu.memory_space<vmem>>, vector<1x4xf32>
    %279 = vector.broadcast %278 : vector<1x4xf32> to vector<16x4xf32>
    %280 = arith.addf %277, %279 : vector<16x4xf32>
    %c0_67 = arith.constant 0 : index
    %c0_68 = arith.constant 0 : index
    %281 = vector.load %arg10[%c0_67, %c0_68] : memref<16x4xf32, #tpu.memory_space<vmem>>, vector<16x4xf32>
    tpu.vector_store %arg10[%c0_67, %c0_68], %280 {strides = array<i32>} : memref<16x4xf32, #tpu.memory_space<vmem>>, vector<16x4xf32>,
    return
  }
}

</mosaic_0001>

<bundles_post_ra>
// kernel: tpu_custom_call.1
= control target key start
LH: loop header
LB: loop body
LE: loop exit
PB: predicated region body
PF: predicated region fallthrough
CT: control target
= control target key end

     0   :  { %17 = vsyncpa [#allocation4], 0  ;;  %s1651_s0 = inlined_call_operand.hbm [shape: bf16[16,16], index: 0, kind: input, shape index: {}]   ;;  %s1652_s1 = inlined_call_operand.hbm [shape: f32[2,32], index: 1, kind: input, shape index: {}]   ;;  %s1653_s2 = inlined_call_operand.hbm [shape: bf16[16,32], index: 2, kind: input, shape index: {}]   ;;  %s1654_s3 = inlined_call_operand.vmem [shape: f32[1,32], index: 3, kind: input, shape index: {}]   ;;  %s1655_s4 = inlined_call_operand.vmem [shape: bf16[32,96], index: 4, kind: input, shape index: {}]   ;;  %s1656_s5 = inlined_call_operand.vmem [shape: f32[1,96], index: 5, kind: input, shape index: {}]   ;;  %s1657_s6 = inlined_call_operand.vmem [shape: bf16[32,96], index: 6, kind: input, shape index: {}]   ;;  %s1658_s7 = inlined_call_operand.vmem [shape: f32[1,96], index: 7, kind: input, shape index: {}]   ;;  %s1659_s8 = inlined_call_operand.vmem [shape: bf16[32,4], index: 8, kind: input, shape index: {}]   ;;  %s1660_s9 = inlined_call_operand.vmem [shape: f32[1,4], index: 9, kind: input, shape index: {}]   ;;  %s1661_s10 = inlined_call_operand.vmem [shape: f32[16,4], index: 10, kind: output, shape index: {0}]   ;;  %s1662_s11 = inlined_call_operand.hbm [shape: f32[2,32], index: 11, kind: output, shape index: {1}]  }
   0x1   :  { %18 = vsyncpa [#allocation7], 0 }
   0x2   :  { %19 = vsyncpa [#allocation5], 0  ;;  %s1303_s17 = smov [#allocation6]   ;;  %s1304_s19 = smov [#allocation3]  }
   0x3   :  { %s38_s18 = sshll.u32 %s1303_s17, 4  ;;  %s25_s20 = sshll.u32 %s1304_s19, 4  ;;  %s39_s18 = int_to_ptr.vmem [resolvable:$true] %s38_s18  ;;  %s1373_s20 = int_to_ptr.vmem [resolvable:$true] %s25_s20 }
   0x4   :  { %s1209_s23 = scalar_lea.hbm %s1652_s1, 32 }
   0x5   :  { %p1210_p0 = scmp.ne.s32.totalorder %s1652_s1, %s1209_s23  ;;  %p1213_p1 = scmp.lt.u32.totalorder %s1209_s23, %s1652_s1 }
   0x7   :  { %p1215_p2 = pnand %p1213_p1, %p1210_p0 }
   0x9   :  { %1218 = shalt.err (!%p1215_p2)
}
   0xa   :  { %s1219_s28 = scalar_lea.vmem %s39_s18, 32  ;;  %p1224_p4 = scmp.lt.s32.totalorder %s39_s18, %s39_s18 }
   0xb   :  { %p1220_p3 = scmp.ne.s32.totalorder %s39_s18, %s1219_s28  ;;  %p1225_p5 = scmp.lt.s32.totalorder %s1219_s28, %s1219_s28 }
   0xd   :  { %p1226_p6 = por %p1225_p5, %p1224_p4 }
   0xf   :  { %p1227_p7 = pnand %p1226_p6, %p1220_p3 }
  0x11   :  { %1230 = shalt.err (!%p1227_p7)
}
  0x12   :  { %41 = dma.hbm_to_vmem [thread:$0]  %s1652_s1, 32, %s39_s18, [#allocation7]  }
  0x13   :  { %s1231_s14 = scalar_lea.hbm %s1651_s0, 128 }
  0x14   :  { %p1232_p8 = scmp.ne.s32.totalorder %s1651_s0, %s1231_s14  ;;  %p1235_p9 = scmp.lt.u32.totalorder %s1231_s14, %s1651_s0 }
  0x16   :  { %p1237_p10 = pnand %p1235_p9, %p1232_p8 }
  0x18   :  { %1240 = shalt.err (!%p1237_p10)
}
  0x19   :  { %s1241_s21 = scalar_lea.vmem %s1373_s20, 128  ;;  %p1246_p12 = scmp.lt.s32.totalorder %s1373_s20, %s1373_s20 }
  0x1a   :  { %p1242_p11 = scmp.ne.s32.totalorder %s1373_s20, %s1241_s21  ;;  %p1247_p13 = scmp.lt.s32.totalorder %s1241_s21, %s1241_s21 }
  0x1c   :  { %p1248_p0 = por %p1247_p13, %p1246_p12 }
  0x1e   :  { %p1249_p1 = pnand %p1248_p0, %p1242_p11 }
  0x20   :  { %1252 = shalt.err (!%p1249_p1)
}
  0x21   :  { %s1305_s1 = smov 64   ;;  %s1306_s18 = smov 4  }
  0x22   :  { %31 = dma.hbm_to_vmem [thread:$0]  %s1651_s0, 128, %s1373_s20, [#allocation4], %s1305_s1, %s1305_s1, %s1306_s18  }
  0x23   :  { %s1307_s24 = smov [#allocation8]   ;;  %s1253_s28 = scalar_lea.hbm %s1653_s2, 128 }
  0x24   :  { %s47_s25 = sshll.u32 %s1307_s24, 4  ;;  %p1254_p2 = scmp.ne.s32.totalorder %s1653_s2, %s1253_s28  ;;  %s48_s25 = int_to_ptr.vmem [resolvable:$true] %s47_s25 }
  0x25   :  { %p1257_p3 = scmp.lt.u32.totalorder %s1253_s28, %s1653_s2 }
  0x27   :  { %p1259_p4 = pnand %p1257_p3, %p1254_p2 }
  0x29   :  { %1262 = shalt.err (!%p1259_p4)
}
  0x2a   :  { %s1263_s14 = scalar_lea.vmem %s48_s25, 128  ;;  %p1268_p6 = scmp.lt.s32.totalorder %s48_s25, %s48_s25 }
  0x2b   :  { %p1264_p5 = scmp.ne.s32.totalorder %s48_s25, %s1263_s14  ;;  %p1269_p7 = scmp.lt.s32.totalorder %s1263_s14, %s1263_s14 }
  0x2d   :  { %p1270_p8 = por %p1269_p7, %p1268_p6 }
  0x2f   :  { %p1271_p9 = pnand %p1270_p8, %p1264_p5 }
  0x31   :  { %1274 = shalt.err (!%p1271_p9)
}
  0x32   :  { %53 = dma.hbm_to_vmem [thread:$0]  %s1653_s2, 128, %s48_s25, [#allocation7], %s1305_s1, %s1305_s1, %s1306_s18  }
  0x33   :  { %1297 = dma.done.wait [#allocation4], 128  }
  0x34   :  { %1298 = vsyncadd [#allocation4], 4294967168 }
  0x35   :  { %1299 = dma.done.wait [#allocation7], 160  }
  0x36   :  { %1300 = vsyncadd [#allocation7], 4294967136  ;;  %v1308_v0 = vmov 0.0   ;;  %vm1309_vm0 = vmmov 0   ;;  %v1153_v1 = vld [vmem:[#allocation8] sm:$0xff]   ;;  %v1154_v2 = vld [vmem:[#allocation3] sm:$0xff]  }
  0x37   :  { %1057 = vmatprep.subr.bf16.mxu0 %v1308_v0  ;;  %1059 = vmatprep.mubr.msk.bf16.mxu0 %vm1309_vm0, %v1308_v0  ;;  %vm100_vm1 = vcmask 130048   ;;  %v1429_v3 = vld [vmem:[%s1657_s6] sm:$0xff]   ;;  %v1435_v4 = vld [vmem:[%s1657_s6 + $0x8] sm:$0xff]   ;;  %v1437_v5 = vld [vmem:[#allocation6] sm:$0x3]  ;;  %vm171_vm2 = vcmask 261120  }
  0x38   :  { %1063 = vmatprep.subr.bf16.mxu1 %v1308_v0  ;;  %1067 = vmatprep.mubr.msk.bf16.mxu1 %vm1309_vm0, %v1308_v0  ;;  %v222_v6 = vpack.c.bf16 %v1437_v5, %v1437_v5  ;;  %v1157_v7 = vld [vmem:[%s1655_s4] sm:$0xff]   ;;  %v1158_v8 = vld [vmem:[%s1655_s4 + $0x8] sm:$0xff]   ;;  %vm318_vm3 = vcmask 254976   ;;  %vm485_vm4 = vcmask 259076   ;;  %vm401_vm5 = vcmask 257026  }
  0x39   :  { %1058 = vmatpush3.bf16.msra.mxu0 %v1153_v1  ;;  %1064 = vmatpush3.bf16.msra.mxu1 %v1157_v7  ;;  %v994_v9 = vld [vmem:[%s1654_s3] ss:$0 sm:$0xff]  ;;  %vm569_vm6 = vcmask 261126  }
  0x3a   :  { %1071 = vmatprep.subr.bf16.mxu0 %v1308_v0  ;;  %1065 = vmatprep.subr.bf16.mxu1 %v1308_v0  ;;  %v1468_v18 = vld [vmem:[%s1658_s7] ss:$0 sm:$0xff]  ;;  %s1311_s7 = smov 32  }
  0x3b   :  { %v998_v25 = vld [vmem:[%s1656_s5] ss:$0 sm:$0xff]  ;;  %s1310_s5 = smov 96  }
  0x3c   :  { %1060 = vmatmul.mubr.msk.bf16.vlgmr.msra.gmra.mrb[0].mxu0 %vm100_vm1, %v1154_v2 }
  0x3d   :  { %1072 = vmatpush3.bf16.msra.mxu0 %v1429_v3  ;;  %1075 = vmatprep.mubr.msk.bf16.mxu0 %vm1309_vm0, %v1308_v0 }
  0x3e   :  { %1073 = vmatprep.subr.bf16.mxu0 %v1308_v0  ;;  %1066 = vmatpush3.bf16.msra.mxu1 %v1158_v8 }
  0x3f   :  { %1079 = vmatprep.subr.bf16.mxu1 %v1308_v0 }
  0x41   :  { %1074 = vmatpush3.bf16.msra.mxu0 %v1435_v4 }
  0x42   :  { %1087 = vmatprep.subr.bf16.mxu0 %v1308_v0 }
  0x44   :  { %1076 = vmatmul.mubr.msk.bf16.vlgmr.msra.gmra.mrb[4].mxu0 %vm171_vm2, %v222_v6 }
  0x45   :  { %1088 = vmatpush3.bf16.msra.mxu0 %v1429_v3  ;;  %1091 = vmatprep.mubr.msk.bf16.mxu0 %vm1309_vm0, %v1308_v0 }
  0x46   :  { %1089 = vmatprep.subr.bf16.mxu0 %v1308_v0 }
  0x49   :  { %1090 = vmatpush3.bf16.msra.mxu0 %v1435_v4 }
  0x4a   :  { %1103 = vmatprep.subr.bf16.mxu0 %v1308_v0 }
 0x10f   :  { %v138_v10 = vpop.f32.mrb[0].mxu0 }
 0x110   :  { %v139_v11 = vadd.f32 %v994_v9, %v138_v10  ;;  %v1061_v12 = vpop.f32.mrb[1].mxu0 }
 0x111   :  { %v141_v13 = vpop.f32.mrb[2].mxu0 }
 0x112   :  { %v142_v14 = vadd.f32 %v994_v9, %v141_v13  ;;  %v1062_v15 = vpop.f32.mrb[3].mxu0  ;;  %v145_v16 = vmax.f32 %v139_v11, 0.0 }
 0x114   :  { %v146_v17 = vmax.f32 %v142_v14, 0.0 }
 0x116   :  { %v147_v19 = vpack.c.bf16 %v146_v17, %v145_v16 }
 0x117   :  { %v278_v20 = vpop.f32.mrb[4].mxu0 }
 0x118   :  { %1068 = vmatmul.mubr.msk.bf16.vlgmr.msra.gmra.mrb[0].mxu1 %vm171_vm2, %v147_v19  ;;  %v279_v21 = vadd.f32 %v1468_v18, %v278_v20  ;;  %v1077_v22 = vpop.f32.mrb[5].mxu0 }
 0x119   :  { %v281_v23 = vpop.f32.mrb[6].mxu0  ;;  %1080 = vmatpush3.bf16.msra.mxu1 %v1429_v3  ;;  %1083 = vmatprep.mubr.msk.bf16.mxu1 %vm1309_vm0, %v1308_v0 }
 0x11a   :  { %v1078_v24 = vpop.f32.mrb[7].mxu0  ;;  %292 = vrot.lane.b32.xlu0 %v279_v21, %s1305_s1  ;;  %1081 = vmatprep.subr.bf16.mxu1 %v1308_v0 }
 0x11d   :  { %1082 = vmatpush3.bf16.msra.mxu1 %v1435_v4 }
 0x11e   :  { %1095 = vmatprep.subr.bf16.mxu1 %v1308_v0 }
 0x18c   :  { %v293_v36 = vpop.permute.xlu0 %292 }
 0x1eb   :  { %v209_v26 = vpop.f32.mrb[0].mxu1 }
 0x1ec   :  { %v1482_v27 = vadd.f32 %v998_v25, %v209_v26  ;;  %v1069_v28 = vpop.f32.mrb[1].mxu1 }
 0x1ed   :  { %v212_v29 = vpop.f32.mrb[2].mxu1 }
 0x1ee   :  { %v1484_v30 = vadd.f32 %v998_v25, %v212_v29  ;;  %v1070_v31 = vpop.f32.mrb[3].mxu1  ;;  %v284_v32 = vadd.f32 %v279_v21, %v1482_v27 }
 0x1f0   :  { %v1006_v33 = vmul.f32 -1.442695, %v284_v32 }
 0x1f2   :  { %1161 = vpow2.f32 %v1006_v33 }
 0x1fc   :  { %v1162_v34 = vpop.eup %1161 }
 0x1fd   :  { %v288_v35 = vadd.f32 1.0, %v1162_v34 }
 0x1ff   :  { %1163 = vrcp.f32 %v288_v35 }
 0x209   :  { %v1164_v37 = vpop.eup %1163 }
 0x20a   :  { %v295_v38 = vmul.f32 %v1164_v37, %v293_v36  ;;  %v302_v43 = vsub.f32 1.0, %v1164_v37 }
 0x20c   :  { %297 = vrot.lane.b32.xlu0 %v295_v38, %s1305_s1 }
 0x27e   :  { %v298_v39 = vpop.permute.xlu0 %297 }
 0x27f   :  { %v300_v40 = vadd.f32 %v298_v39, %v1482_v27 }
 0x281   :  { %1165 = vtanh.f32 %v300_v40 }
 0x28b   :  { %v1166_v41 = vpop.eup %1165 }
 0x28c   :  { %304 = vrot.lane.b32.xlu1 %v1166_v41, %s1310_s5 }
 0x290   :  { %309 = vrot.lane.b32.xlu1 %v1437_v5, %s1311_s7 }
 0x2fe   :  { %v305_v42 = vpop.permute.xlu1 %304 }
 0x2ff   :  { %v307_v45 = vmul.f32 %v305_v42, %v302_v43 }
 0x302   :  { %v310_v44 = vpop.permute.xlu1 %309 }
 0x303   :  { %v312_v46 = vmul.f32 %v1164_v37, %v310_v44 }
 0x305   :  { %v1491_v47 = vadd.f32 %v312_v46, %v307_v45 }
 0x307   :  { %v320_v48 = vpack.c.bf16 %v1491_v47, %v1491_v47  ;;  %v393_v6 = vrot.slane %v1491_v47, 6 }
 0x309   :  { %322 = vrot.lane.b32.xlu0 %v320_v48, %s1310_s5 }
 0x37b   :  { %v323_v49 = vpop.permute.xlu0 %322 }
 0x37c   :  { %1084 = vmatmul.mubr.msk.bf16.vlgmr.msra.gmra.mrb[4].mxu1 %vm171_vm2, %v323_v49 }
 0x37d   :  { %1096 = vmatpush3.bf16.msra.mxu1 %v1429_v3  ;;  %1099 = vmatprep.mubr.msk.bf16.mxu1 %vm1309_vm0, %v1308_v0 }
 0x37e   :  { %1097 = vmatprep.subr.bf16.mxu1 %v1308_v0 }
 0x381   :  { %1098 = vmatpush3.bf16.msra.mxu1 %v1435_v4 }
 0x382   :  { %1111 = vmatprep.subr.bf16.mxu1 %v1308_v0 }
 0x44f   :  { %v361_v50 = vpop.f32.mrb[4].mxu1 }
 0x450   :  { %v362_v51 = vadd.f32 %v1468_v18, %v361_v50  ;;  %v1085_v52 = vpop.f32.mrb[5].mxu1 }
 0x451   :  { %v364_v53 = vpop.f32.mrb[6].mxu1 }
 0x452   :  { %v368_v54 = vrot.slane %v362_v51, 6  ;;  %v1086_v55 = vpop.f32.mrb[7].mxu1 }
 0x454   :  { %377 = vrot.lane.b32.xlu1 %v368_v54, %s1305_s1  ;;  %v370_v56 = vadd.f32 %v368_v54, %v1482_v27 }
 0x456   :  { %v1008_v57 = vmul.f32 -1.442695, %v370_v56 }
 0x458   :  { %1167 = vpow2.f32 %v1008_v57 }
 0x462   :  { %v1168_v58 = vpop.eup %1167 }
 0x463   :  { %v374_v59 = vadd.f32 1.0, %v1168_v58 }
 0x465   :  { %1169 = vrcp.f32 %v374_v59 }
 0x46f   :  { %v1170_v60 = vpop.eup %1169 }
 0x470   :  { %v387_v5 = vsub.f32 1.0, %v1170_v60  ;;  %v395_v8 = vmul.f32 %v1170_v60, %v393_v6 }
 0x4c6   :  { %v378_v61 = vpop.permute.xlu1 %377 }
 0x4c7   :  { %v380_v62 = vmul.f32 %v1170_v60, %v378_v61 }
 0x4c9   :  { %382 = vrot.lane.b32.xlu0 %v380_v62, %s1305_s1 }
 0x53b   :  { %v383_v63 = vpop.permute.xlu0 %382 }
 0x53c   :  { %v385_v1 = vadd.f32 %v383_v63, %v1482_v27 }
 0x53e   :  { %1171 = vtanh.f32 %v385_v1 }
 0x548   :  { %v1172_v2 = vpop.eup %1171 }
 0x549   :  { %389 = vrot.lane.b32.xlu1 %v1172_v2, %s1310_s5 }
 0x5bb   :  { %v390_v7 = vpop.permute.xlu1 %389 }
 0x5bc   :  { %v392_v9 = vmul.f32 %v390_v7, %v387_v5 }
 0x5be   :  { %v1510_v10 = vadd.f32 %v395_v8, %v392_v9 }
 0x5c0   :  { %v403_v11 = vpack.c.bf16 %v1510_v10, %v1510_v10  ;;  %v477_v34 = vrot.slane %v1510_v10, 6 }
 0x5c2   :  { %v405_v12 = vrot.slane %v403_v11, 1 }
 0x5c4   :  { %406 = vrot.lane.b32.xlu0 %v405_v12, %s1310_s5 }
 0x636   :  { %v407_v13 = vpop.permute.xlu0 %406 }
 0x637   :  { %1092 = vmatmul.mubr.msk.bf16.vlgmr.msra.gmra.mrb[8].mxu0 %vm171_vm2, %v407_v13 }
 0x638   :  { %1104 = vmatpush3.bf16.msra.mxu0 %v1429_v3  ;;  %1107 = vmatprep.mubr.msk.bf16.mxu0 %vm1309_vm0, %v1308_v0 }
 0x639   :  { %1105 = vmatprep.subr.bf16.mxu0 %v1308_v0 }
 0x63c   :  { %1106 = vmatpush3.bf16.msra.mxu0 %v1435_v4 }
 0x63d   :  { %1119 = vmatprep.subr.bf16.mxu0 %v1308_v0 }
 0x70a   :  { %v445_v14 = vpop.f32.mrb[8].mxu0 }
 0x70b   :  { %v446_v15 = vadd.f32 %v1468_v18, %v445_v14  ;;  %v1093_v16 = vpop.f32.mrb[9].mxu0 }
 0x70c   :  { %v448_v17 = vpop.f32.mrb[10].mxu0 }
 0x70d   :  { %v452_v19 = vrot.slane %v446_v15, 4  ;;  %v1094_v20 = vpop.f32.mrb[11].mxu0 }
 0x70f   :  { %461 = vrot.lane.b32.xlu1 %v452_v19, %s1305_s1  ;;  %v454_v21 = vadd.f32 %v452_v19, %v1482_v27 }
 0x711   :  { %v1010_v22 = vmul.f32 -1.442695, %v454_v21 }
 0x713   :  { %1173 = vpow2.f32 %v1010_v22 }
 0x71d   :  { %v1174_v23 = vpop.eup %1173 }
 0x71e   :  { %v458_v24 = vadd.f32 1.0, %v1174_v23 }
 0x720   :  { %1175 = vrcp.f32 %v458_v24 }
 0x72a   :  { %v1176_v25 = vpop.eup %1175 }
 0x72b   :  { %v471_v33 = vsub.f32 1.0, %v1176_v25  ;;  %v479_v36 = vmul.f32 %v1176_v25, %v477_v34 }
 0x781   :  { %v462_v26 = vpop.permute.xlu1 %461 }
 0x782   :  { %v464_v28 = vmul.f32 %v1176_v25, %v462_v26 }
 0x784   :  { %466 = vrot.lane.b32.xlu0 %v464_v28, %s1305_s1 }
 0x7f6   :  { %v467_v29 = vpop.permute.xlu0 %466 }
 0x7f7   :  { %v469_v31 = vadd.f32 %v467_v29, %v1482_v27 }
 0x7f9   :  { %1177 = vtanh.f32 %v469_v31 }
 0x803   :  { %v1178_v32 = vpop.eup %1177 }
 0x804   :  { %473 = vrot.lane.b32.xlu1 %v1178_v32, %s1310_s5 }
 0x876   :  { %v474_v35 = vpop.permute.xlu1 %473 }
 0x877   :  { %v476_v37 = vmul.f32 %v474_v35, %v471_v33 }
 0x879   :  { %v1529_v38 = vadd.f32 %v479_v36, %v476_v37 }
 0x87b   :  { %v487_v39 = vpack.c.bf16 %v1529_v38, %v1529_v38  ;;  %v561_v60 = vrot.slane %v1529_v38, 6 }
 0x87d   :  { %v489_v40 = vrot.slane %v487_v39, 2 }
 0x87f   :  { %490 = vrot.lane.b32.xlu0 %v489_v40, %s1310_s5 }
 0x8f1   :  { %v491_v41 = vpop.permute.xlu0 %490 }
 0x8f2   :  { %1100 = vmatmul.mubr.msk.bf16.vlgmr.msra.gmra.mrb[8].mxu1 %vm171_vm2, %v491_v41 }
 0x8f3   :  { %1112 = vmatpush3.bf16.msra.mxu1 %v1429_v3  ;;  %1115 = vmatprep.mubr.msk.bf16.mxu1 %vm1309_vm0, %v1308_v0 }
 0x8f4   :  { %1113 = vmatprep.subr.bf16.mxu1 %v1308_v0 }
 0x8f7   :  { %1114 = vmatpush3.bf16.msra.mxu1 %v1435_v4 }
 0x8f8   :  { %1127 = vmatprep.subr.bf16.mxu1 %v1308_v0 }
 0x9c5   :  { %v529_v42 = vpop.f32.mrb[8].mxu1 }
 0x9c6   :  { %v530_v43 = vadd.f32 %v1468_v18, %v529_v42  ;;  %v1101_v44 = vpop.f32.mrb[9].mxu1 }
 0x9c7   :  { %v532_v45 = vpop.f32.mrb[10].mxu1 }
 0x9c8   :  { %v536_v46 = vrot.slane %v530_v43, 2  ;;  %v1102_v48 = vpop.f32.mrb[11].mxu1 }
 0x9ca   :  { %545 = vrot.lane.b32.xlu1 %v536_v46, %s1305_s1  ;;  %v538_v49 = vadd.f32 %v536_v46, %v1482_v27 }
 0x9cc   :  { %v1012_v50 = vmul.f32 -1.442695, %v538_v49 }
 0x9ce   :  { %1179 = vpow2.f32 %v1012_v50 }
 0x9d8   :  { %v1180_v51 = vpop.eup %1179 }
 0x9d9   :  { %v542_v52 = vadd.f32 1.0, %v1180_v51 }
 0x9db   :  { %1181 = vrcp.f32 %v542_v52 }
 0x9e5   :  { %v1182_v53 = vpop.eup %1181 }
 0x9e6   :  { %v555_v59 = vsub.f32 1.0, %v1182_v53  ;;  %v563_v62 = vmul.f32 %v1182_v53, %v561_v60 }
 0xa3c   :  { %v546_v54 = vpop.permute.xlu1 %545 }
 0xa3d   :  { %v548_v55 = vmul.f32 %v1182_v53, %v546_v54 }
 0xa3f   :  { %550 = vrot.lane.b32.xlu0 %v548_v55, %s1305_s1 }
 0xab1   :  { %v551_v56 = vpop.permute.xlu0 %550 }
 0xab2   :  { %v553_v57 = vadd.f32 %v551_v56, %v1482_v27 }
 0xab4   :  { %1183 = vtanh.f32 %v553_v57 }
 0xabe   :  { %v1184_v58 = vpop.eup %1183 }
 0xabf   :  { %557 = vrot.lane.b32.xlu1 %v1184_v58, %s1310_s5 }
 0xb31   :  { %v558_v61 = vpop.permute.xlu1 %557 }
 0xb32   :  { %v560_v63 = vmul.f32 %v558_v61, %v555_v59 }
 0xb34   :  { %v1548_v1 = vadd.f32 %v563_v62, %v560_v63 }
 0xb36   :  { %v571_v2 = vpack.c.bf16 %v1548_v1, %v1548_v1  ;;  %v643_v24 = vrot.slane %v1548_v1, 6 }
 0xb38   :  { %v573_v5 = vrot.slane %v571_v2, 3 }
 0xb3a   :  { %574 = vrot.lane.b32.xlu0 %v573_v5, %s1310_s5 }
 0xbac   :  { %v575_v6 = vpop.permute.xlu0 %574 }
 0xbad   :  { %1108 = vmatmul.mubr.msk.bf16.vlgmr.msra.gmra.mrb[12].mxu0 %vm171_vm2, %v575_v6 }
 0xbae   :  { %1120 = vmatpush3.bf16.msra.mxu0 %v1429_v3  ;;  %1123 = vmatprep.mubr.msk.bf16.mxu0 %vm1309_vm0, %v1308_v0 }
 0xbaf   :  { %1121 = vmatprep.subr.bf16.mxu0 %v1308_v0 }
 0xbb2   :  { %1122 = vmatpush3.bf16.msra.mxu0 %v1435_v4 }
 0xbb3   :  { %1135 = vmatprep.subr.bf16.mxu0 %v1308_v0 }
 0xc80   :  { %v613_v27 = vpop.f32.mrb[12].mxu0 }
 0xc81   :  { %v614_v7 = vadd.f32 %v1468_v18, %v613_v27  ;;  %v1109_v8 = vpop.f32.mrb[13].mxu0 }
 0xc82   :  { %v616_v9 = vpop.f32.mrb[14].mxu0 }
 0xc83   :  { %627 = vrot.lane.b32.xlu1 %v614_v7, %s1305_s1  ;;  %v1110_v11 = vpop.f32.mrb[15].mxu0  ;;  %v619_v12 = vadd.f32 %v614_v7, %v1484_v30 }
 0xc85   :  { %v1014_v13 = vmul.f32 -1.442695, %v619_v12 }
 0xc87   :  { %1185 = vpow2.f32 %v1014_v13 }
 0xc91   :  { %v1186_v14 = vpop.eup %1185 }
 0xc92   :  { %v623_v15 = vadd.f32 1.0, %v1186_v14 }
 0xc94   :  { %1187 = vrcp.f32 %v623_v15 }
 0xc9e   :  { %v1188_v16 = vpop.eup %1187 }
 0xc9f   :  { %v637_v23 = vsub.f32 1.0, %v1188_v16  ;;  %v645_v26 = vmul.f32 %v1188_v16, %v643_v24 }
 0xcf5   :  { %v628_v17 = vpop.permute.xlu1 %627 }
 0xcf6   :  { %v630_v19 = vmul.f32 %v1188_v16, %v628_v17 }
 0xcf8   :  { %632 = vrot.lane.b32.xlu0 %v630_v19, %s1305_s1 }
 0xd6a   :  { %v633_v20 = vpop.permute.xlu0 %632 }
 0xd6b   :  { %v635_v21 = vadd.f32 %v633_v20, %v1484_v30 }
 0xd6d   :  { %1189 = vtanh.f32 %v635_v21 }
 0xd77   :  { %v1190_v22 = vpop.eup %1189 }
 0xd78   :  { %639 = vrot.lane.b32.xlu1 %v1190_v22, %s1310_s5 }
 0xdea   :  { %v640_v25 = vpop.permute.xlu1 %639 }
 0xdeb   :  { %v642_v28 = vmul.f32 %v640_v25, %v637_v23 }
 0xded   :  { %v1567_v29 = vadd.f32 %v645_v26, %v642_v28 }
 0xdef   :  { %v652_v31 = vpack.c.bf16 %v1567_v29, %v1567_v29  ;;  %v725_v50 = vrot.slane %v1567_v29, 6 }
 0xdf1   :  { %654 = vrot.lane.b32.xlu0 %v652_v31, %s1310_s5 }
 0xe63   :  { %v655_v32 = vpop.permute.xlu0 %654 }
 0xe64   :  { %1116 = vmatmul.mubr.msk.bf16.vlgmr.msra.gmra.mrb[12].mxu1 %vm171_vm2, %v655_v32 }
 0xe65   :  { %1128 = vmatpush3.bf16.msra.mxu1 %v1429_v3  ;;  %1131 = vmatprep.mubr.msk.bf16.mxu1 %vm1309_vm0, %v1308_v0 }
 0xe66   :  { %1129 = vmatprep.subr.bf16.mxu1 %v1308_v0 }
 0xe69   :  { %1130 = vmatpush3.bf16.msra.mxu1 %v1435_v4 }
 0xf37   :  { %v693_v33 = vpop.f32.mrb[12].mxu1 }
 0xf38   :  { %v694_v34 = vadd.f32 %v1468_v18, %v693_v33  ;;  %v1117_v35 = vpop.f32.mrb[13].mxu1 }
 0xf39   :  { %v696_v36 = vpop.f32.mrb[14].mxu1 }
 0xf3a   :  { %v700_v37 = vrot.slane %v694_v34, 6  ;;  %v1118_v39 = vpop.f32.mrb[15].mxu1 }
 0xf3c   :  { %709 = vrot.lane.b32.xlu1 %v700_v37, %s1305_s1  ;;  %v702_v40 = vadd.f32 %v700_v37, %v1484_v30 }
 0xf3e   :  { %v1016_v41 = vmul.f32 -1.442695, %v702_v40 }
 0xf40   :  { %1191 = vpow2.f32 %v1016_v41 }
 0xf4a   :  { %v1192_v3 = vpop.eup %1191 }
 0xf4b   :  { %v706_v42 = vadd.f32 1.0, %v1192_v3 }
 0xf4d   :  { %1193 = vrcp.f32 %v706_v42 }
 0xf57   :  { %v1194_v43 = vpop.eup %1193 }
 0xf58   :  { %v719_v49 = vsub.f32 1.0, %v1194_v43  ;;  %v727_v52 = vmul.f32 %v1194_v43, %v725_v50 }
 0xfae   :  { %v710_v44 = vpop.permute.xlu1 %709 }
 0xfaf   :  { %v712_v45 = vmul.f32 %v1194_v43, %v710_v44 }
 0xfb1   :  { %714 = vrot.lane.b32.xlu0 %v712_v45, %s1305_s1 }
0x1023   :  { %v715_v4 = vpop.permute.xlu0 %714 }
0x1024   :  { %v717_v46 = vadd.f32 %v715_v4, %v1484_v30 }
0x1026   :  { %1195 = vtanh.f32 %v717_v46 }
0x1030   :  { %v1196_v48 = vpop.eup %1195 }
0x1031   :  { %721 = vrot.lane.b32.xlu1 %v1196_v48, %s1310_s5 }
0x10a3   :  { %v722_v51 = vpop.permute.xlu1 %721 }
0x10a4   :  { %v724_v53 = vmul.f32 %v722_v51, %v719_v49 }
0x10a6   :  { %v1585_v54 = vadd.f32 %v727_v52, %v724_v53 }
0x10a8   :  { %v734_v55 = vpack.c.bf16 %v1585_v54, %v1585_v54  ;;  %v808_v15 = vrot.slane %v1585_v54, 6 }
0x10aa   :  { %v736_v56 = vrot.slane %v734_v55, 1 }
0x10ac   :  { %737 = vrot.lane.b32.xlu0 %v736_v56, %s1310_s5 }
0x111e   :  { %v738_v57 = vpop.permute.xlu0 %737 }
0x111f   :  { %1124 = vmatmul.mubr.msk.bf16.vlgmr.msra.gmra.mrb[16].mxu0 %vm171_vm2, %v738_v57 }
0x1120   :  { %1139 = vmatprep.mubr.msk.bf16.mxu0 %vm1309_vm0, %v1308_v0 }
0x11f2   :  { %v776_v58 = vpop.f32.mrb[16].mxu0 }
0x11f3   :  { %v777_v59 = vadd.f32 %v1468_v18, %v776_v58  ;;  %v1125_v60 = vpop.f32.mrb[17].mxu0 }
0x11f4   :  { %v779_v61 = vpop.f32.mrb[18].mxu0 }
0x11f5   :  { %v783_v62 = vrot.slane %v777_v59, 4  ;;  %v1126_v63 = vpop.f32.mrb[19].mxu0 }
0x11f7   :  { %792 = vrot.lane.b32.xlu1 %v783_v62, %s1305_s1  ;;  %v785_v2 = vadd.f32 %v783_v62, %v1484_v30 }
0x11f9   :  { %v1018_v5 = vmul.f32 -1.442695, %v785_v2 }
0x11fb   :  { %1197 = vpow2.f32 %v1018_v5 }
0x1205   :  { %v1198_v6 = vpop.eup %1197 }
0x1206   :  { %v789_v27 = vadd.f32 1.0, %v1198_v6 }
0x1208   :  { %1199 = vrcp.f32 %v789_v27 }
0x1212   :  { %v1200_v7 = vpop.eup %1199 }
0x1213   :  { %v802_v14 = vsub.f32 1.0, %v1200_v7  ;;  %v810_v17 = vmul.f32 %v1200_v7, %v808_v15 }
0x1269   :  { %v793_v8 = vpop.permute.xlu1 %792 }
0x126a   :  { %v795_v9 = vmul.f32 %v1200_v7, %v793_v8 }
0x126c   :  { %797 = vrot.lane.b32.xlu0 %v795_v9, %s1305_s1 }
0x12de   :  { %v798_v11 = vpop.permute.xlu0 %797 }
0x12df   :  { %v800_v12 = vadd.f32 %v798_v11, %v1484_v30 }
0x12e1   :  { %1201 = vtanh.f32 %v800_v12 }
0x12eb   :  { %v1202_v13 = vpop.eup %1201 }
0x12ec   :  { %804 = vrot.lane.b32.xlu1 %v1202_v13, %s1310_s5 }
0x135e   :  { %v805_v16 = vpop.permute.xlu1 %804 }
0x135f   :  { %v807_v19 = vmul.f32 %v805_v16, %v802_v14 }
0x1361   :  { %v811_v20 = vadd.f32 %v810_v17, %v807_v19 }
0x1363   :  { %v817_v21 = vpack.c.bf16 %v811_v20, %v811_v20 }
0x1365   :  { %v819_v22 = vrot.slane %v817_v21, 2 }
0x1367   :  { %820 = vrot.lane.b32.xlu0 %v819_v22, %s1310_s5 }
0x13d9   :  { %v821_v23 = vpop.permute.xlu0 %820 }
0x13da   :  { %1132 = vmatmul.mubr.msk.bf16.vlgmr.msra.gmra.mrb[16].mxu1 %vm171_vm2, %v821_v23 }
0x14ad   :  { %v859_v24 = vpop.f32.mrb[16].mxu1 }
0x14ae   :  { %v860_v25 = vadd.f32 %v1468_v18, %v859_v24  ;;  %v1133_v26 = vpop.f32.mrb[17].mxu1 }
0x14af   :  { %v862_v28 = vpop.f32.mrb[18].mxu1 }
0x14b0   :  { %v866_v31 = vrot.slane %v860_v25, 2  ;;  %v1134_v32 = vpop.f32.mrb[19].mxu1 }
0x14b2   :  { %875 = vrot.lane.b32.xlu1 %v866_v31, %s1305_s1  ;;  %v868_v33 = vadd.f32 %v866_v31, %v1484_v30 }
0x14b4   :  { %v1020_v34 = vmul.f32 -1.442695, %v868_v33 }
0x14b6   :  { %1203 = vpow2.f32 %v1020_v34 }
0x14c0   :  { %v1204_v35 = vpop.eup %1203 }
0x14c1   :  { %v872_v36 = vadd.f32 1.0, %v1204_v35 }
0x14c3   :  { %1205 = vrcp.f32 %v872_v36 }
0x14cd   :  { %v1206_v37 = vpop.eup %1205 }
0x14ce   :  { %v885_v44 = vsub.f32 1.0, %v1206_v37 }
0x1524   :  { %v876_v39 = vpop.permute.xlu1 %875 }
0x1525   :  { %v878_v40 = vmul.f32 %v1206_v37, %v876_v39 }
0x1527   :  { %880 = vrot.lane.b32.xlu0 %v878_v40, %s1305_s1 }
0x152b   :  { %315 = vrot.lane.b32.xlu0 %v1491_v47, %s1310_s5 }
0x152f   :  { %482 = vrot.lane.b32.xlu0 %v1529_v38, %s1310_s5 }
0x1533   :  { %648 = vrot.lane.b32.xlu0 %v1567_v29, %s1310_s5  ;;  %v1160_v29 = vld [vmem:[%s1659_s8 + $0x8] sm:$0xff]  }
0x1537   :  { %813 = vrot.lane.b32.xlu0 %v811_v20, %s1310_s5 }
0x1599   :  { %v881_v18 = vpop.permute.xlu0 %880 }
0x159a   :  { %v883_v41 = vadd.f32 %v881_v18, %v1484_v30  ;;  %v1159_v30 = vld [vmem:[%s1659_s8] sm:$0xff]   ;;  %s1312_s8 = smov [#allocation9]  }
0x159b   :  { %1136 = vmatpush3.bf16.msra.mxu0 %v1159_v30  ;;  %s982_s29 = sshll.u32 %s1312_s8, 4  ;;  %s983_s29 = int_to_ptr.vmem [resolvable:$true] %s982_s29 }
0x159c   :  { %1207 = vtanh.f32 %v883_v41  ;;  %1137 = vmatprep.subr.bf16.mxu0 %v1308_v0  ;;  %s1275_s30 = scalar_lea.vmem %s983_s29, 32  ;;  %p1280_p11 = scmp.lt.s32.totalorder %s983_s29, %s983_s29 }
0x159d   :  { %v316_v3 = vpop.permute.xlu0 %315  ;;  %p1276_p10 = scmp.ne.s32.totalorder %s983_s29, %s1275_s30  ;;  %p1281_p12 = scmp.lt.s32.totalorder %s1275_s30, %s1275_s30 }
0x159e   :  { %319 = vst.msk [vmem:[#allocation2] sm:$0x3] %vm318_vm3, %v316_v3 }
0x159f   :  { %1138 = vmatpush3.bf16.msra.mxu0 %v1160_v29  ;;  %p1282_p13 = por %p1281_p12, %p1280_p11 }
0x15a1   :  { %v483_v42 = vpop.permute.xlu0 %482  ;;  %p1283_p0 = pnand %p1282_p13, %p1276_p10 }
0x15a2   :  { %486 = vst.msk [vmem:[#allocation2] sm:$0x30] %vm485_vm4, %v483_v42 }
0x15a5   :  { %v649_v43 = vpop.permute.xlu0 %648 }
0x15a6   :  { %v1208_v47 = vpop.eup %1207  ;;  %651 = vst.msk [vmem:[#allocation2 + $0x8] sm:$0x3] %vm318_vm3, %v649_v43 }
0x15a7   :  { %887 = vrot.lane.b32.xlu1 %v1208_v47, %s1310_s5 }
0x15a9   :  { %v814_v38 = vpop.permute.xlu0 %813 }
0x15aa   :  { %816 = vst.msk [vmem:[#allocation2 + $0x8] sm:$0x30] %vm485_vm4, %v814_v38 }
0x15ab   :  { %398 = vrot.lane.b32.xlu1 %v1510_v10, %s1310_s5  ;;  %v891_v10 = vrot.slane %v811_v20, 6 }
0x15ad   :  { %v893_v4 = vmul.f32 %v1206_v37, %v891_v10 }
0x15af   :  { %566 = vrot.lane.b32.xlu1 %v1548_v1, %s1310_s5 }
0x15b3   :  { %730 = vrot.lane.b32.xlu1 %v1585_v54, %s1310_s5 }
0x1619   :  { %v888_v45 = vpop.permute.xlu1 %887 }
0x161a   :  { %v890_v1 = vmul.f32 %v888_v45, %v885_v44 }
0x161c   :  { %v894_v46 = vadd.f32 %v893_v4, %v890_v1 }
0x161d   :  { %v399_v48 = vpop.permute.xlu1 %398 }
0x161e   :  { %402 = vst.msk [vmem:[#allocation2] sm:$0xc] %vm401_vm5, %v399_v48  ;;  %896 = vrot.lane.b32.xlu1 %v894_v46, %s1310_s5 }
0x1621   :  { %v567_v49 = vpop.permute.xlu1 %566 }
0x1622   :  { %570 = vst.msk [vmem:[#allocation2] sm:$0xc0] %vm569_vm6, %v567_v49 }
0x1625   :  { %v731_v50 = vpop.permute.xlu1 %730 }
0x1626   :  { %733 = vst.msk [vmem:[#allocation2 + $0x8] sm:$0xc] %vm401_vm5, %v731_v50 }
0x1629   :  { %v901_v0 = vld [vmem:[#allocation2] sm:$0xff] }
0x1690   :  { %v897_v51 = vpop.permute.xlu1 %896 }
0x1691   :  { %899 = vst.msk [vmem:[#allocation2 + $0x8] sm:$0xc0] %vm569_vm6, %v897_v51  ;;  %900 = vst.msk [vmem:[#allocation9 - $0x6] sm:$0xc0] %vm569_vm6, %v897_v51 }
0x1698   :  { %v902_v52 = vld [vmem:[#allocation2 + $0x8] sm:$0xff] }
0x1699   :  { %v903_v53 = vpack.c.bf16 %v902_v52, %v901_v0 }
0x169b   :  { %1140 = vmatmul.mubr.msk.bf16.vlgmr.msra.gmra.mrb[20].mxu0 %vm171_vm2, %v903_v53 }
0x169c   :  { %1286 = shalt.err (!%p1283_p0)
}
0x169d   :  { %s1287_s14 = scalar_lea.hbm %s1662_s11, 32 }
0x169e   :  { %p1288_p1 = scmp.ne.s32.totalorder %s1662_s11, %s1287_s14  ;;  %p1291_p2 = scmp.lt.u32.totalorder %s1287_s14, %s1662_s11 }
0x16a0   :  { %p1293_p3 = pnand %p1291_p2, %p1288_p1 }
0x16a2   :  { %1296 = shalt.err (!%p1293_p3)
}
0x16a3   :  { %985 = dma.vmem_to_hbm [thread:$0]  %s983_s29, 32, %s1662_s11, [#allocation5]   ;;  %v1021_v54 = vld [vmem:[%s1660_s9] ss:$0 sm:$0xff]  ;;  %vm971_vm7 = vcmask 31744  }
0x176e   :  { %v964_v55 = vpop.f32.mrb[20].mxu0 }
0x176f   :  { %v965_v56 = vadd.f32 %v1021_v54, %v964_v55  ;;  %v1141_v57 = vpop.f32.mrb[21].mxu0 }
0x1770   :  { %v967_v58 = vpop.f32.mrb[22].mxu0 }
0x1771   :  { %972 = vst.msk [vmem:[%s1661_s10] sm:$0xff] %vm971_vm7, %v965_v56  ;;  %v968_v59 = vadd.f32 %v1021_v54, %v967_v58  ;;  %v1142_v60 = vpop.f32.mrb[23].mxu0 }
0x1773   :  { %973 = vst.msk [vmem:[%s1661_s10 + $0x8] sm:$0xff] %vm971_vm7, %v968_v59 }
0x1774   :  { %1301 = dma.done.wait [#allocation5], 32  }
0x1775   :  { %1302 = vsyncadd [#allocation5], 4294967264 }
0x1776   :  { %991 = vsyncpa [#allocation4], 1 }
0x1777   :  { %992 = vsyncpa [#allocation7], 1 }
0x1778   :  { %993 = vsyncpa [#allocation5], 1 }

</bundles_post_ra>
